<compile_context>
chip_gen: v6e
topology: v6e:2x2x1
jax: 0.10.0
libtpu: 0.0.40
codegen_flags: <defaults>
</compile_context>

<pallas_src>
import jax
import jax.numpy as jnp
from jax.experimental import pallas as pl
from jax.experimental.pallas import tpu as pltpu

# ----- model config (small, consistent with the module) -----
VOCAB = 50
VOCAB_PREFIX = 30
VOCAB_SUFFIX = 30
EMBED_DIM = 8            # 5 * EMBED_DIM = 40
WINDOW = 5
BATCH_SIZE = 8
HIDDEN_DIM = 32
OUTPUT_SIZE = 16

# padded / derived sizes for TPU-friendly layout
VOCAB_TOTAL = VOCAB + VOCAB_PREFIX + VOCAB_SUFFIX   # 110
VOCAB_PAD = 128                                     # one-hot lane width per window
FOLD_K = WINDOW * VOCAB_PAD                         # 640: K dim of the fused matmul
HIDDEN_PAD = 128                                    # lane-dense hidden activation
OUT_PAD = 128                                       # lane-dense output store
MAX_TILE_B = 1024                                   # ~3 MiB/tile of VMEM; far under limits


def _round_up(x, m):
    return (x + m - 1) // m * m


def _choose_tiling(b):
    """Pick (tile_b, padded_b).  Small batches: one tile.  Large batches:
    tiles that are multiples of 256 and >= 2 grid steps (both v7x TCs)."""
    b8 = _round_up(b, 8)
    if b8 <= 256:
        return b8, b8
    tile = min(MAX_TILE_B, _round_up((b8 + 1) // 2, 256))
    return tile, _round_up(b8, tile)


def mlp_kernel(idx_ref, w1f_ref, b1_ref, w2_ref, b2_ref, out_ref):
    """Fused gather-as-matmul + linear1 + tanh + linear2 for one batch tile.

    idx_ref : (TILE_B, 3*WINDOW) int32; cols [0:5)=word, [5:10)=prefix,
              [10:15)=suffix, already offset into the concatenated table.
    w1f_ref : (FOLD_K, HIDDEN_PAD) f32  -- embedding table folded into W1,
              window-major along rows, zero-padded past HIDDEN_DIM columns.
    b1_ref  : (1, HIDDEN_PAD) f32       (zero-padded past HIDDEN_DIM)
    w2_ref  : (HIDDEN_PAD, OUT_PAD) f32 (zero-padded past HIDDEN_DIM/OUTPUT_SIZE)
    b2_ref  : (1, OUT_PAD) f32          (zero-padded past OUTPUT_SIZE)
    out_ref : (TILE_B, OUT_PAD) f32
    """
    tile_b = idx_ref.shape[0]
    idx = idx_ref[...]
    lane = jax.lax.broadcasted_iota(jnp.int32, (tile_b, VOCAB_PAD), 1)

    # Multi-hot per window (3 disjoint ones per row), combined with logical_or
    # and cast once per window; concatenated window-major to (TILE_B, 640) so
    # the embedding gather + Linear1 is a single MXU matmul against w1f.
    parts = []
    for w in range(WINDOW):
        hot = lane == idx[:, w:w + 1]                                   # word
        hot = jnp.logical_or(hot, lane == idx[:, WINDOW + w:WINDOW + w + 1])      # prefix
        hot = jnp.logical_or(hot, lane == idx[:, 2 * WINDOW + w:2 * WINDOW + w + 1])  # suffix
        parts.append(hot.astype(jnp.float32))
    multi_hot = jnp.concatenate(parts, axis=1)                          # (TILE_B, 640)

    acc = jnp.dot(multi_hot, w1f_ref[...], preferred_element_type=jnp.float32)
    h = jnp.tanh(acc + b1_ref[...])                                     # (TILE_B, 128)
    y = jnp.dot(h, w2_ref[...], preferred_element_type=jnp.float32) + b2_ref[...]
    out_ref[...] = y.astype(out_ref.dtype)


def mlp_forward(params, inputs, inputs_prefix, inputs_suffix):
    """inputs*: (B, 5) integer index arrays.  Returns (B, OUTPUT_SIZE) f32."""
    B = inputs.shape[0]

    # --- static parameter re-layout (tiny; fuses away under jit) ---
    big_table = jnp.zeros((VOCAB_PAD, EMBED_DIM), jnp.float32)
    big_table = big_table.at[:VOCAB].set(params["embeds"])
    big_table = big_table.at[VOCAB:VOCAB + VOCAB_PREFIX].set(params["embeds_prefix"])
    big_table = big_table.at[VOCAB + VOCAB_PREFIX:VOCAB_TOTAL].set(params["embeds_suffix"])

    # Fold the table into W1: per window (128, E) @ (E, H) -> (128, H); stack
    # window-major -> (640, H); zero-pad hidden to 128.
    w1 = params["w1"]
    w1_fold_small = jnp.concatenate(
        [big_table @ w1[w * EMBED_DIM:(w + 1) * EMBED_DIM, :] for w in range(WINDOW)],
        axis=0)                                                   # (640, HIDDEN_DIM)
    w1_fold = jnp.zeros((FOLD_K, HIDDEN_PAD), jnp.float32).at[:, :HIDDEN_DIM].set(w1_fold_small)
    b1_pad = jnp.zeros((1, HIDDEN_PAD), jnp.float32).at[:, :HIDDEN_DIM].set(params["b1"])
    w2_pad = jnp.zeros((HIDDEN_PAD, OUT_PAD), jnp.float32).at[:HIDDEN_DIM, :OUTPUT_SIZE].set(params["w2"])
    b2_pad = jnp.zeros((1, OUT_PAD), jnp.float32).at[:, :OUTPUT_SIZE].set(params["b2"])

    # --- one stacked index slab, offset into the concatenated table ---
    idx = jnp.concatenate(
        [inputs,
         inputs_prefix + VOCAB,
         inputs_suffix + VOCAB + VOCAB_PREFIX], axis=1).astype(jnp.int32)

    # --- batch tiling ---
    tile_b, b_pad = _choose_tiling(B)
    if b_pad != B:
        idx = jnp.pad(idx, ((0, b_pad - B), (0, 0)))   # pad rows hit table row 0; sliced off below
    grid = (b_pad // tile_b,)

    cost = pl.CostEstimate(
        flops=int(2 * b_pad * (FOLD_K * HIDDEN_PAD + HIDDEN_PAD * OUT_PAD)),
        transcendentals=int(b_pad * HIDDEN_PAD),
        bytes_accessed=int(4 * (b_pad * 3 * WINDOW
                                + FOLD_K * HIDDEN_PAD + HIDDEN_PAD
                                + HIDDEN_PAD * OUT_PAD + OUT_PAD
                                + b_pad * OUT_PAD)),
    )

    y_pad = pl.pallas_call(
        mlp_kernel,
        out_shape=jax.ShapeDtypeStruct((b_pad, OUT_PAD), jnp.float32),
        grid_spec=pltpu.PrefetchScalarGridSpec(
            num_scalar_prefetch=0,
            grid=grid,
            in_specs=[
                pl.BlockSpec((tile_b, 3 * WINDOW), lambda i: (i, 0)),       # indices
                pl.BlockSpec((FOLD_K, HIDDEN_PAD), lambda i: (0, 0)),       # folded W1
                pl.BlockSpec((1, HIDDEN_PAD), lambda i: (0, 0)),            # b1
                pl.BlockSpec((HIDDEN_PAD, OUT_PAD), lambda i: (0, 0)),      # W2
                pl.BlockSpec((1, OUT_PAD), lambda i: (0, 0)),               # b2
            ],
            out_specs=pl.BlockSpec((tile_b, OUT_PAD), lambda i: (i, 0)),
        ),
        compiler_params=pltpu.CompilerParams(
            dimension_semantics=("parallel",)),
        cost_estimate=cost,
    )(idx, w1_fold, b1_pad, w2_pad, b2_pad)

    return y_pad[:B, :OUTPUT_SIZE]


def init_params(key):
    ks = jax.random.split(key, 7)
    # nn.Embedding default init: N(0, 1)
    embeds = jax.random.normal(ks[0], (VOCAB, EMBED_DIM), jnp.float32)
    embeds_prefix = jax.random.normal(ks[1], (VOCAB_PREFIX, EMBED_DIM), jnp.float32)
    embeds_suffix = jax.random.normal(ks[2], (VOCAB_SUFFIX, EMBED_DIM), jnp.float32)
    # nn.Linear default init: U(-1/sqrt(fan_in), 1/sqrt(fan_in)); stored as (in, out)
    in1 = WINDOW * EMBED_DIM
    lim1 = 1.0 / jnp.sqrt(in1)
    w1 = jax.random.uniform(ks[3], (in1, HIDDEN_DIM), jnp.float32, -lim1, lim1)
    b1 = jax.random.uniform(ks[4], (1, HIDDEN_DIM), jnp.float32, -lim1, lim1)
    lim2 = 1.0 / jnp.sqrt(HIDDEN_DIM)
    w2 = jax.random.uniform(ks[5], (HIDDEN_DIM, OUTPUT_SIZE), jnp.float32, -lim2, lim2)
    b2 = jax.random.uniform(ks[6], (1, OUTPUT_SIZE), jnp.float32, -lim2, lim2)
    return dict(
        embeds=embeds, embeds_prefix=embeds_prefix, embeds_suffix=embeds_suffix,
        w1=w1, b1=b1, w2=w2, b2=b2,
    )


if __name__ == "__main__":
    key = jax.random.PRNGKey(0)
    pkey, k1, k2, k3 = jax.random.split(key, 4)
    params = init_params(pkey)

    inputs = jax.random.randint(k1, (BATCH_SIZE, WINDOW), 0, VOCAB, jnp.int32)
    inputs_prefix = jax.random.randint(k2, (BATCH_SIZE, WINDOW), 0, VOCAB_PREFIX, jnp.int32)
    inputs_suffix = jax.random.randint(k3, (BATCH_SIZE, WINDOW), 0, VOCAB_SUFFIX, jnp.int32)

    fwd = jax.jit(mlp_forward)
    y_hat = fwd(params, inputs, inputs_prefix, inputs_suffix)
    jax.block_until_ready(y_hat)

    # Pure-JAX reference check (original unfolded math)
    e = params["embeds"][inputs].reshape(BATCH_SIZE, WINDOW * EMBED_DIM)
    p = params["embeds_prefix"][inputs_prefix].reshape(BATCH_SIZE, WINDOW * EMBED_DIM)
    s = params["embeds_suffix"][inputs_suffix].reshape(BATCH_SIZE, WINDOW * EMBED_DIM)
    ref = jnp.tanh((e + p + s) @ params["w1"] + params["b1"]) @ params["w2"] + params["b2"]
    assert y_hat.shape == (BATCH_SIZE, OUTPUT_SIZE)
    assert jnp.allclose(y_hat, ref, atol=1e-4, rtol=1e-4), "mismatch vs reference"

    print("KERNEL_OK")
</pallas_src>

<mosaic_0001>
module attributes {stable_mosaic.version = 11 : i64} {
  func.func @mlp_kernel(%arg0: i32, %arg1: memref<8x15xi32, #tpu.memory_space<vmem>>, %arg2: memref<640x128xf32, #tpu.memory_space<vmem>>, %arg3: memref<1x128xf32, #tpu.memory_space<vmem>>, %arg4: memref<128x128xf32, #tpu.memory_space<vmem>>, %arg5: memref<1x128xf32, #tpu.memory_space<vmem>>, %arg6: memref<8x128xf32, #tpu.memory_space<vmem>>) attributes {dimension_semantics = [#tpu.dimension_semantics<parallel>], iteration_bounds = array<i64: 1>, scalar_prefetch = 0 : i64, scratch_operands = 0 : i64, tpu.core_type = #tpu.core_type<tc>, window_params = [{transform_indices = @transform_0, window_bounds = array<i64: 8, 15>}, {pipeline_mode = #tpu.pipeline_mode<synchronous>, transform_indices = @transform_1, window_bounds = array<i64: 640, 128>}, {pipeline_mode = #tpu.pipeline_mode<synchronous>, transform_indices = @transform_2, window_bounds = array<i64: 1, 128>}, {pipeline_mode = #tpu.pipeline_mode<synchronous>, transform_indices = @transform_3, window_bounds = array<i64: 128, 128>}, {pipeline_mode = #tpu.pipeline_mode<synchronous>, transform_indices = @transform_4, window_bounds = array<i64: 1, 128>}, {transform_indices = @transform_5, window_bounds = array<i64: 8, 128>}]} {
    %c0 = arith.constant 0 : index
    %c0_0 = arith.constant 0 : index
    %0 = vector.load %arg1[%c0, %c0_0] : memref<8x15xi32, #tpu.memory_space<vmem>>, vector<8x15xi32>
    %1 = tpu.iota {dimensions = array<i32: 1>} : vector<8x128xi32>
    %2 = vector.extract_strided_slice %0 {offsets = [0, 0], sizes = [8, 1], strides = [1, 1]} : vector<8x15xi32> to vector<8x1xi32>
    %3 = vector.broadcast %2 : vector<8x1xi32> to vector<8x128xi32>
    %4 = arith.cmpi eq, %1, %3 : vector<8x128xi32>
    %5 = vector.extract_strided_slice %0 {offsets = [0, 5], sizes = [8, 1], strides = [1, 1]} : vector<8x15xi32> to vector<8x1xi32>
    %6 = vector.broadcast %5 : vector<8x1xi32> to vector<8x128xi32>
    %7 = arith.cmpi eq, %1, %6 : vector<8x128xi32>
    %8 = arith.ori %4, %7 : vector<8x128xi1>
    %9 = vector.extract_strided_slice %0 {offsets = [0, 10], sizes = [8, 1], strides = [1, 1]} : vector<8x15xi32> to vector<8x1xi32>
    %10 = vector.broadcast %9 : vector<8x1xi32> to vector<8x128xi32>
    %11 = arith.cmpi eq, %1, %10 : vector<8x128xi32>
    %12 = arith.ori %8, %11 : vector<8x128xi1>
    %13 = arith.extui %12 : vector<8x128xi1> to vector<8x128xi32>
    %14 = arith.sitofp %13 : vector<8x128xi32> to vector<8x128xf32>
    %15 = vector.extract_strided_slice %0 {offsets = [0, 1], sizes = [8, 1], strides = [1, 1]} : vector<8x15xi32> to vector<8x1xi32>
    %16 = vector.broadcast %15 : vector<8x1xi32> to vector<8x128xi32>
    %17 = arith.cmpi eq, %1, %16 : vector<8x128xi32>
    %18 = vector.extract_strided_slice %0 {offsets = [0, 6], sizes = [8, 1], strides = [1, 1]} : vector<8x15xi32> to vector<8x1xi32>
    %19 = vector.broadcast %18 : vector<8x1xi32> to vector<8x128xi32>
    %20 = arith.cmpi eq, %1, %19 : vector<8x128xi32>
    %21 = arith.ori %17, %20 : vector<8x128xi1>
    %22 = vector.extract_strided_slice %0 {offsets = [0, 11], sizes = [8, 1], strides = [1, 1]} : vector<8x15xi32> to vector<8x1xi32>
    %23 = vector.broadcast %22 : vector<8x1xi32> to vector<8x128xi32>
    %24 = arith.cmpi eq, %1, %23 : vector<8x128xi32>
    %25 = arith.ori %21, %24 : vector<8x128xi1>
    %26 = arith.extui %25 : vector<8x128xi1> to vector<8x128xi32>
    %27 = arith.sitofp %26 : vector<8x128xi32> to vector<8x128xf32>
    %28 = vector.extract_strided_slice %0 {offsets = [0, 2], sizes = [8, 1], strides = [1, 1]} : vector<8x15xi32> to vector<8x1xi32>
    %29 = vector.broadcast %28 : vector<8x1xi32> to vector<8x128xi32>
    %30 = arith.cmpi eq, %1, %29 : vector<8x128xi32>
    %31 = vector.extract_strided_slice %0 {offsets = [0, 7], sizes = [8, 1], strides = [1, 1]} : vector<8x15xi32> to vector<8x1xi32>
    %32 = vector.broadcast %31 : vector<8x1xi32> to vector<8x128xi32>
    %33 = arith.cmpi eq, %1, %32 : vector<8x128xi32>
    %34 = arith.ori %30, %33 : vector<8x128xi1>
    %35 = vector.extract_strided_slice %0 {offsets = [0, 12], sizes = [8, 1], strides = [1, 1]} : vector<8x15xi32> to vector<8x1xi32>
    %36 = vector.broadcast %35 : vector<8x1xi32> to vector<8x128xi32>
    %37 = arith.cmpi eq, %1, %36 : vector<8x128xi32>
    %38 = arith.ori %34, %37 : vector<8x128xi1>
    %39 = arith.extui %38 : vector<8x128xi1> to vector<8x128xi32>
    %40 = arith.sitofp %39 : vector<8x128xi32> to vector<8x128xf32>
    %41 = vector.extract_strided_slice %0 {offsets = [0, 3], sizes = [8, 1], strides = [1, 1]} : vector<8x15xi32> to vector<8x1xi32>
    %42 = vector.broadcast %41 : vector<8x1xi32> to vector<8x128xi32>
    %43 = arith.cmpi eq, %1, %42 : vector<8x128xi32>
    %44 = vector.extract_strided_slice %0 {offsets = [0, 8], sizes = [8, 1], strides = [1, 1]} : vector<8x15xi32> to vector<8x1xi32>
    %45 = vector.broadcast %44 : vector<8x1xi32> to vector<8x128xi32>
    %46 = arith.cmpi eq, %1, %45 : vector<8x128xi32>
    %47 = arith.ori %43, %46 : vector<8x128xi1>
    %48 = vector.extract_strided_slice %0 {offsets = [0, 13], sizes = [8, 1], strides = [1, 1]} : vector<8x15xi32> to vector<8x1xi32>
    %49 = vector.broadcast %48 : vector<8x1xi32> to vector<8x128xi32>
    %50 = arith.cmpi eq, %1, %49 : vector<8x128xi32>
    %51 = arith.ori %47, %50 : vector<8x128xi1>
    %52 = arith.extui %51 : vector<8x128xi1> to vector<8x128xi32>
    %53 = arith.sitofp %52 : vector<8x128xi32> to vector<8x128xf32>
    %54 = vector.extract_strided_slice %0 {offsets = [0, 4], sizes = [8, 1], strides = [1, 1]} : vector<8x15xi32> to vector<8x1xi32>
    %55 = vector.broadcast %54 : vector<8x1xi32> to vector<8x128xi32>
    %56 = arith.cmpi eq, %1, %55 : vector<8x128xi32>
    %57 = vector.extract_strided_slice %0 {offsets = [0, 9], sizes = [8, 1], strides = [1, 1]} : vector<8x15xi32> to vector<8x1xi32>
    %58 = vector.broadcast %57 : vector<8x1xi32> to vector<8x128xi32>
    %59 = arith.cmpi eq, %1, %58 : vector<8x128xi32>
    %60 = arith.ori %56, %59 : vector<8x128xi1>
    %61 = vector.extract_strided_slice %0 {offsets = [0, 14], sizes = [8, 1], strides = [1, 1]} : vector<8x15xi32> to vector<8x1xi32>
    %62 = vector.broadcast %61 : vector<8x1xi32> to vector<8x128xi32>
    %63 = arith.cmpi eq, %1, %62 : vector<8x128xi32>
    %64 = arith.ori %60, %63 : vector<8x128xi1>
    %65 = arith.extui %64 : vector<8x128xi1> to vector<8x128xi32>
    %66 = arith.sitofp %65 : vector<8x128xi32> to vector<8x128xf32>
    %67 = tpu.concatenate %14, %27, %40, %53, %66 in 1 : vector<8x128xf32>, vector<8x128xf32>, vector<8x128xf32>, vector<8x128xf32>, vector<8x128xf32> -> vector<8x640xf32>
    %c0_1 = arith.constant 0 : index
    %c0_2 = arith.constant 0 : index
    %68 = vector.load %arg2[%c0_1, %c0_2] : memref<640x128xf32, #tpu.memory_space<vmem>>, vector<640x128xf32>
    %cst = arith.constant dense<0.000000e+00> : vector<8x128xf32>
    %69 = tpu.matmul %67, %68, %cst {dimension_numbers = #tpu.dot_dimension_numbers<[1], [0], [0], [1], [0, 0, 1, 1], [], []>} : vector<8x640xf32>, vector<640x128xf32>, vector<8x128xf32> -> vector<8x128xf32>
    %c0_3 = arith.constant 0 : index
    %c0_4 = arith.constant 0 : index
    %70 = vector.load %arg3[%c0_3, %c0_4] : memref<1x128xf32, #tpu.memory_space<vmem>>, vector<1x128xf32>
    %71 = vector.broadcast %70 : vector<1x128xf32> to vector<8x128xf32>
    %72 = arith.addf %69, %71 : vector<8x128xf32>
    %73 = math.tanh %72 : vector<8x128xf32>
    %c0_5 = arith.constant 0 : index
    %c0_6 = arith.constant 0 : index
    %74 = vector.load %arg4[%c0_5, %c0_6] : memref<128x128xf32, #tpu.memory_space<vmem>>, vector<128x128xf32>
    %cst_7 = arith.constant dense<0.000000e+00> : vector<8x128xf32>
    %75 = tpu.matmul %73, %74, %cst_7 {dimension_numbers = #tpu.dot_dimension_numbers<[1], [0], [0], [1], [0, 0, 1, 1], [], []>} : vector<8x128xf32>, vector<128x128xf32>, vector<8x128xf32> -> vector<8x128xf32>
    %c0_8 = arith.constant 0 : index
    %c0_9 = arith.constant 0 : index
    %76 = vector.load %arg5[%c0_8, %c0_9] : memref<1x128xf32, #tpu.memory_space<vmem>>, vector<1x128xf32>
    %77 = vector.broadcast %76 : vector<1x128xf32> to vector<8x128xf32>
    %78 = arith.addf %75, %77 : vector<8x128xf32>
    %c0_10 = arith.constant 0 : index
    %c0_11 = arith.constant 0 : index
    %79 = vector.load %arg6[%c0_10, %c0_11] : memref<8x128xf32, #tpu.memory_space<vmem>>, vector<8x128xf32>
    tpu.vector_store %arg6[%c0_10, %c0_11], %78 {strides = array<i32>} : memref<8x128xf32, #tpu.memory_space<vmem>>, vector<8x128xf32>,
    return
  }
  func.func @transform_0(%arg0: i32) -> (i32, i32) {
    %c0_i32 = arith.constant 0 : i32
    %c0_i32_0 = arith.constant 0 : i32
    return %arg0, %c0_i32 : i32, i32
  }
  func.func @transform_1(%arg0: i32) -> (i32, i32) {
    %c0_i32 = arith.constant 0 : i32
    %c0_i32_0 = arith.constant 0 : i32
    %c0_i32_1 = arith.constant 0 : i32
    return %c0_i32, %c0_i32_0 : i32, i32
  }
  func.func @transform_2(%arg0: i32) -> (i32, i32) {
    %c0_i32 = arith.constant 0 : i32
    %c0_i32_0 = arith.constant 0 : i32
    %c0_i32_1 = arith.constant 0 : i32
    return %c0_i32, %c0_i32_0 : i32, i32
  }
  func.func @transform_3(%arg0: i32) -> (i32, i32) {
    %c0_i32 = arith.constant 0 : i32
    %c0_i32_0 = arith.constant 0 : i32
    %c0_i32_1 = arith.constant 0 : i32
    return %c0_i32, %c0_i32_0 : i32, i32
  }
  func.func @transform_4(%arg0: i32) -> (i32, i32) {
    %c0_i32 = arith.constant 0 : i32
    %c0_i32_0 = arith.constant 0 : i32
    %c0_i32_1 = arith.constant 0 : i32
    return %c0_i32, %c0_i32_0 : i32, i32
  }
  func.func @transform_5(%arg0: i32) -> (i32, i32) {
    %c0_i32 = arith.constant 0 : i32
    %c0_i32_0 = arith.constant 0 : i32
    return %arg0, %c0_i32 : i32, i32
  }
}

</mosaic_0001>

<bundles_post_ra>
// kernel: mlp_forward.1
= control target key start
LH: loop header
LB: loop body
LE: loop exit
PB: predicated region body
PF: predicated region fallthrough
CT: control target
= control target key end

     0   :  { %v754_v2 = vmov 1   ;;  %v755_v3 = vmov 0   ;;  %v756_v7 = vmov 5   ;;  %v757_v8 = vmov 6   ;;  %s1178_s0 = inlined_call_operand.vmem [shape: s32[8,15], index: 0, kind: input, shape index: {}]   ;;  %s1179_s1 = inlined_call_operand.vmem [shape: f32[640,128], index: 1, kind: input, shape index: {}]   ;;  %s1180_s2 = inlined_call_operand.vmem [shape: f32[1,128], index: 2, kind: input, shape index: {}]   ;;  %s1181_s3 = inlined_call_operand.vmem [shape: f32[128,128], index: 3, kind: input, shape index: {}]   ;;  %s1182_s4 = inlined_call_operand.vmem [shape: f32[1,128], index: 4, kind: input, shape index: {}]   ;;  %s1183_s5 = inlined_call_operand.hbm [shape: f32[8,128], index: 5, kind: output, shape index: {}]  }
   0x1   :  { %v806_v0 = vld [vmem:[%s1178_s0] sm:$0xff]  ;;  %v135_v1 = vld [vmem:[%s1179_s1 + $0xf8] sm:$0xff]  ;;  %715 = vset.pattern.permute.xlu0 %v754_v2  ;;  %717 = vset.pattern.permute.xlu1 %v755_v3  ;;  %v134_v5 = vld [vmem:[%s1179_s1 + $0xf0] sm:$0xff]  ;;  %v758_v15 = vmov 11   ;;  %v759_v16 = vmov 10   ;;  %v760_v23 = vmov 3  }
   0x2   :  { %v119_v4 = vld [vmem:[%s1179_s1 + $0x78] sm:$0xff]  ;;  %25 = vperm.xlu1 %717, %v806_v0   ;;  %41 = vperm.xlu0 %715, %v806_v0   ;;  %v118_v6 = vld [vmem:[%s1179_s1 + $0x70] sm:$0xff]  ;;  %v133_v9 = vld [vmem:[%s1179_s1 + $0xe8] sm:$0xff]  ;;  %v761_v24 = vmov 2  }
   0x3   :  { %522 = vmatprep.subr.mxu0 %v135_v1  ;;  %v117_v10 = vld [vmem:[%s1179_s1 + $0x68] sm:$0xff]  ;;  %v167_v11 = vld [vmem:[%s1179_s1 + $0x1f8] sm:$0xff]  ;;  %v132_v13 = vld [vmem:[%s1179_s1 + $0xe0] sm:$0xff] }
   0x4   :  { %523 = vmatpush3.msra.mxu0 %v119_v4  ;;  %557 = vmatprep.subr.mxu1 %v167_v11  ;;  %v151_v12 = vld [vmem:[%s1179_s1 + $0x178] sm:$0xff]  ;;  %v166_v14 = vld [vmem:[%s1179_s1 + $0x1f0] sm:$0xff]  ;;  %v116_v17 = vld [vmem:[%s1179_s1 + $0x60] sm:$0xff] }
   0x5   :  { %524 = vmatprep.subr.mxu0 %v134_v5  ;;  %558 = vmatpush3.msra.mxu1 %v151_v12  ;;  %v150_v18 = vld [vmem:[%s1179_s1 + $0x170] sm:$0xff]  ;;  %v131_v19 = vld [vmem:[%s1179_s1 + $0xd8] sm:$0xff]  ;;  %v165_v20 = vld [vmem:[%s1179_s1 + $0x1e8] sm:$0xff] }
   0x6   :  { %718 = vset.pattern.permute.xlu1 %v756_v7  ;;  %716 = vset.pattern.permute.xlu0 %v757_v8  ;;  %v115_v21 = vld [vmem:[%s1179_s1 + $0x58] sm:$0xff]  ;;  %v149_v22 = vld [vmem:[%s1179_s1 + $0x168] sm:$0xff]  ;;  %v130_v25 = vld [vmem:[%s1179_s1 + $0xd0] sm:$0xff] }
   0x7   :  { %29 = vperm.xlu1 %718, %v806_v0   ;;  %45 = vperm.xlu0 %716, %v806_v0   ;;  %v164_v26 = vld [vmem:[%s1179_s1 + $0x1e0] sm:$0xff]  ;;  %v114_v27 = vld [vmem:[%s1179_s1 + $0x50] sm:$0xff]  ;;  %v129_v29 = vld [vmem:[%s1179_s1 + $0xc8] sm:$0xff] }
   0x8   :  { %525 = vmatpush3.msra.mxu0 %v118_v6  ;;  %559 = vmatprep.subr.mxu1 %v166_v14  ;;  %v148_v28 = vld [vmem:[%s1179_s1 + $0x160] sm:$0xff]  ;;  %v163_v30 = vld [vmem:[%s1179_s1 + $0x1d8] sm:$0xff] }
   0x9   :  { %526 = vmatprep.subr.mxu0 %v133_v9  ;;  %560 = vmatpush3.msra.mxu1 %v150_v18 }
   0xa   :  { %527 = vmatpush3.msra.mxu0 %v117_v10  ;;  %561 = vmatprep.subr.mxu1 %v165_v20 }
   0xb   :  { %719 = vset.pattern.permute.xlu1 %v758_v15  ;;  %720 = vset.pattern.permute.xlu0 %v759_v16 }
   0xc   :  { %50 = vperm.xlu1 %719, %v806_v0   ;;  %34 = vperm.xlu0 %720, %v806_v0  }
   0xd   :  { %528 = vmatprep.subr.mxu0 %v132_v13  ;;  %562 = vmatpush3.msra.mxu1 %v149_v22 }
   0xe   :  { %529 = vmatpush3.msra.mxu0 %v116_v17  ;;  %563 = vmatprep.subr.mxu1 %v164_v26 }
   0xf   :  { %530 = vmatprep.subr.mxu0 %v131_v19  ;;  %564 = vmatpush3.msra.mxu1 %v148_v28 }
  0x10   :  { %721 = vset.pattern.permute.xlu1 %v760_v23  ;;  %723 = vset.pattern.permute.xlu0 %v761_v24 }
  0x11   :  { %73 = vperm.xlu1 %721, %v806_v0   ;;  %57 = vperm.xlu0 %723, %v806_v0  }
  0x12   :  { %531 = vmatpush3.msra.mxu0 %v115_v21 }
  0x13   :  { %532 = vmatprep.subr.mxu0 %v130_v25 }
  0x14   :  { %533 = vmatpush3.msra.mxu0 %v114_v27 }
  0x15   :  { %10 = vsyncpa [#allocation3], 0  ;;  %v762_v31 = vmov 8   ;;  %v763_v32 = vmov 12   ;;  %v113_v33 = vld [vmem:[%s1179_s1 + $0x48] sm:$0xff]  ;;  %v147_v34 = vld [vmem:[%s1179_s1 + $0x158] sm:$0xff]  ;;  %534 = vmatprep.subr.mxu0 %v129_v29  ;;  %565 = vmatprep.subr.mxu1 %v163_v30  ;;  %v22_v19 = vlaneseq }
  0x16   :  { %722 = vset.pattern.permute.xlu1 %v762_v31  ;;  %726 = vset.pattern.permute.xlu0 %v763_v32  ;;  %v128_v35 = vld [vmem:[%s1179_s1 + $0xc0] sm:$0xff]  ;;  %v162_v36 = vld [vmem:[%s1179_s1 + $0x1d0] sm:$0xff]  ;;  %v764_v39 = vmov 7   ;;  %v765_v40 = vmov 14   ;;  %v127_v41 = vld [vmem:[%s1179_s1 + $0xb8] sm:$0xff]  ;;  %v766_v49 = vmov 13  }
  0x17   :  { %77 = vperm.xlu1 %722, %v806_v0   ;;  %66 = vperm.xlu0 %726, %v806_v0   ;;  %v112_v37 = vld [vmem:[%s1179_s1 + $0x40] sm:$0xff]  ;;  %v146_v38 = vld [vmem:[%s1179_s1 + $0x150] sm:$0xff]  ;;  %v161_v42 = vld [vmem:[%s1179_s1 + $0x1c8] sm:$0xff]  ;;  %v767_v58 = vmov 4   ;;  %v768_v4 = vmov 9   ;;  %v769_v10 = vmov 0.0  }
  0x18   :  { %535 = vmatpush3.msra.mxu0 %v113_v33  ;;  %566 = vmatpush3.msra.mxu1 %v147_v34  ;;  %v111_v43 = vld [vmem:[%s1179_s1 + $0x38] sm:$0xff]  ;;  %v145_v44 = vld [vmem:[%s1179_s1 + $0x148] sm:$0xff]  ;;  %v126_v45 = vld [vmem:[%s1179_s1 + $0xb0] sm:$0xff]  ;;  %v1017_v20 = vand.u32 127, %v22_v19  ;;  %v770_v26 = vmov 1.0   ;;  %vm771_vm10 = vmmov 0  }
  0x19   :  { %536 = vmatprep.subr.mxu0 %v128_v35  ;;  %567 = vmatprep.subr.mxu1 %v162_v36  ;;  %v110_v46 = vld [vmem:[%s1179_s1 + $0x30] sm:$0xff]  ;;  %v125_v47 = vld [vmem:[%s1179_s1 + $0xa8] sm:$0xff]  ;;  %v160_v48 = vld [vmem:[%s1179_s1 + $0x1c0] sm:$0xff]  ;;  %s772_s30 = smov [#allocation2]  }
  0x1a   :  { %537 = vmatpush3.msra.mxu0 %v112_v37  ;;  %568 = vmatpush3.msra.mxu1 %v146_v38  ;;  %v109_v50 = vld [vmem:[%s1179_s1 + $0x28] sm:$0xff]  ;;  %v144_v51 = vld [vmem:[%s1179_s1 + $0x140] sm:$0xff]  ;;  %v159_v53 = vld [vmem:[%s1179_s1 + $0x1b8] sm:$0xff]  ;;  %s502_s6 = sshll.u32 %s772_s30, 4  ;;  %s503_s6 = int_to_ptr.vmem [resolvable:$true] %s502_s6 }
  0x1b   :  { %724 = vset.pattern.permute.xlu1 %v764_v39  ;;  %729 = vset.pattern.permute.xlu0 %v765_v40  ;;  %v124_v52 = vld [vmem:[%s1179_s1 + $0xa0] sm:$0xff]  ;;  %v123_v55 = vld [vmem:[%s1179_s1 + $0x98] sm:$0xff]  ;;  %v122_v59 = vld [vmem:[%s1179_s1 + $0x90] sm:$0xff]  ;;  %p737_p1 = scmp.lt.s32.totalorder %s503_s6, %s503_s6 }
  0x1c   :  { %61 = vperm.xlu1 %724, %v806_v0   ;;  %98 = vperm.xlu0 %729, %v806_v0   ;;  %v108_v54 = vld [vmem:[%s1179_s1 + $0x20] sm:$0xff]  ;;  %v107_v56 = vld [vmem:[%s1179_s1 + $0x18] sm:$0xff]  ;;  %v158_v60 = vld [vmem:[%s1179_s1 + $0x1b0] sm:$0xff] }
  0x1d   :  { %538 = vmatprep.subr.mxu0 %v127_v41  ;;  %569 = vmatprep.subr.mxu1 %v161_v42  ;;  %v143_v57 = vld [vmem:[%s1179_s1 + $0x138] sm:$0xff]  ;;  %v106_v61 = vld [vmem:[%s1179_s1 + $0x10] sm:$0xff]  ;;  %v121_v63 = vld [vmem:[%s1179_s1 + $0x88] sm:$0xff] }
  0x1e   :  { %539 = vmatpush3.msra.mxu0 %v111_v43  ;;  %570 = vmatpush3.msra.mxu1 %v145_v44  ;;  %v142_v62 = vld [vmem:[%s1179_s1 + $0x130] sm:$0xff]  ;;  %v105_v1 = vld [vmem:[%s1179_s1 + $0x8] sm:$0xff]  ;;  %v120_v2 = vld [vmem:[%s1179_s1 + $0x80] sm:$0xff] }
  0x1f   :  { %540 = vmatprep.subr.mxu0 %v126_v45  ;;  %571 = vmatprep.subr.mxu1 %v160_v48  ;;  %v157_v3 = vld [vmem:[%s1179_s1 + $0x1a8] sm:$0xff]  ;;  %v104_v5 = vld [vmem:[%s1179_s1] sm:$0xff]  ;;  %v155_v9 = vld [vmem:[%s1179_s1 + $0x198] sm:$0xff] }
  0x20   :  { %725 = vset.pattern.permute.xlu1 %v766_v49  ;;  %541 = vmatpush3.msra.mxu0 %v110_v46  ;;  %v141_v6 = vld [vmem:[%s1179_s1 + $0x128] sm:$0xff]  ;;  %v156_v7 = vld [vmem:[%s1179_s1 + $0x1a0] sm:$0xff]  ;;  %v154_v11 = vld [vmem:[%s1179_s1 + $0x190] sm:$0xff] }
  0x21   :  { %82 = vperm.xlu1 %725, %v806_v0   ;;  %542 = vmatprep.subr.mxu0 %v125_v47  ;;  %v140_v8 = vld [vmem:[%s1179_s1 + $0x120] sm:$0xff]  ;;  %v138_v12 = vld [vmem:[%s1179_s1 + $0x110] sm:$0xff]  ;;  %v153_v13 = vld [vmem:[%s1179_s1 + $0x188] sm:$0xff] }
  0x22   :  { %543 = vmatpush3.msra.mxu0 %v109_v50  ;;  %572 = vmatpush3.msra.mxu1 %v144_v51  ;;  %v137_v14 = vld [vmem:[%s1179_s1 + $0x108] sm:$0xff]  ;;  %v152_v15 = vld [vmem:[%s1179_s1 + $0x180] sm:$0xff]  ;;  %v183_v25 = vld [vmem:[%s1179_s1 + $0x278] sm:$0xff] }
  0x23   :  { %544 = vmatprep.subr.mxu0 %v124_v52  ;;  %573 = vmatprep.subr.mxu1 %v159_v53  ;;  %v136_v16 = vld [vmem:[%s1179_s1 + $0x100] sm:$0xff]  ;;  %v182_v28 = vld [vmem:[%s1179_s1 + $0x270] sm:$0xff]  ;;  %v181_v29 = vld [vmem:[%s1179_s1 + $0x268] sm:$0xff] }
  0x24   :  { %545 = vmatpush3.msra.mxu0 %v108_v54  ;;  %574 = vmatpush3.msra.mxu1 %v143_v57  ;;  %v180_v30 = vld [vmem:[%s1179_s1 + $0x260] sm:$0xff]  ;;  %v179_v32 = vld [vmem:[%s1179_s1 + $0x258] sm:$0xff]  ;;  %v178_v34 = vld [vmem:[%s1179_s1 + $0x250] sm:$0xff] }
  0x25   :  { %727 = vset.pattern.permute.xlu1 %v767_v58  ;;  %546 = vmatprep.subr.mxu0 %v123_v55  ;;  %v177_v36 = vld [vmem:[%s1179_s1 + $0x248] sm:$0xff]  ;;  %v176_v38 = vld [vmem:[%s1179_s1 + $0x240] sm:$0xff]  ;;  %v175_v39 = vld [vmem:[%s1179_s1 + $0x238] sm:$0xff] }
  0x26   :  { %89 = vperm.xlu1 %727, %v806_v0   ;;  %547 = vmatpush3.msra.mxu0 %v107_v56  ;;  %v174_v41 = vld [vmem:[%s1179_s1 + $0x230] sm:$0xff]  ;;  %v173_v42 = vld [vmem:[%s1179_s1 + $0x228] sm:$0xff]  ;;  %v172_v44 = vld [vmem:[%s1179_s1 + $0x220] sm:$0xff] }
  0x27   :  { %548 = vmatprep.subr.mxu0 %v122_v59  ;;  %575 = vmatprep.subr.mxu1 %v158_v60  ;;  %v171_v45 = vld [vmem:[%s1179_s1 + $0x218] sm:$0xff]  ;;  %v170_v47 = vld [vmem:[%s1179_s1 + $0x210] sm:$0xff]  ;;  %v169_v49 = vld [vmem:[%s1179_s1 + $0x208] sm:$0xff] }
  0x28   :  { %549 = vmatpush3.msra.mxu0 %v106_v61  ;;  %576 = vmatpush3.msra.mxu1 %v142_v62  ;;  %v168_v50 = vld [vmem:[%s1179_s1 + $0x200] sm:$0xff]  ;;  %v417_v51 = vld [vmem:[%s1181_s3 + $0x78] sm:$0xff]  ;;  %v416_v52 = vld [vmem:[%s1181_s3 + $0x70] sm:$0xff] }
  0x29   :  { %550 = vmatprep.subr.mxu0 %v121_v63  ;;  %577 = vmatprep.subr.mxu1 %v157_v3  ;;  %v415_v53 = vld [vmem:[%s1181_s3 + $0x68] sm:$0xff]  ;;  %v414_v54 = vld [vmem:[%s1181_s3 + $0x60] sm:$0xff]  ;;  %v413_v55 = vld [vmem:[%s1181_s3 + $0x58] sm:$0xff] }
  0x2a   :  { %728 = vset.pattern.permute.xlu1 %v768_v4  ;;  %551 = vmatpush3.msra.mxu0 %v105_v1  ;;  %v412_v56 = vld [vmem:[%s1181_s3 + $0x50] sm:$0xff]  ;;  %v411_v57 = vld [vmem:[%s1181_s3 + $0x48] sm:$0xff]  ;;  %v410_v58 = vld [vmem:[%s1181_s3 + $0x40] sm:$0xff] }
  0x2b   :  { %93 = vperm.xlu1 %728, %v806_v0   ;;  %552 = vmatprep.subr.mxu0 %v120_v2  ;;  %v139_v0 = vld [vmem:[%s1179_s1 + $0x118] sm:$0xff]  ;;  %v408_v60 = vld [vmem:[%s1181_s3 + $0x30] sm:$0xff]  ;;  %v407_v61 = vld [vmem:[%s1181_s3 + $0x28] sm:$0xff] }
  0x2c   :  { %553 = vmatpush3.msra.mxu0 %v104_v5  ;;  %578 = vmatpush3.msra.mxu1 %v141_v6  ;;  %v409_v59 = vld [vmem:[%s1181_s3 + $0x38] sm:$0xff]  ;;  %v406_v62 = vld [vmem:[%s1181_s3 + $0x20] sm:$0xff]  ;;  %v404_v1 = vld [vmem:[%s1181_s3 + $0x10] sm:$0xff] }
  0x2d   :  { %626 = vmatprep.subr.mxu0 %v769_v10  ;;  %579 = vmatprep.subr.mxu1 %v156_v7  ;;  %v405_v63 = vld [vmem:[%s1181_s3 + $0x18] sm:$0xff]  ;;  %v403_v2 = vld [vmem:[%s1181_s3 + $0x8] sm:$0xff]  ;;  %v402_v3 = vld [vmem:[%s1181_s3] sm:$0xff] }
  0x2e   :  { %580 = vmatpush3.msra.mxu1 %v140_v8 }
  0x2f   :  { %581 = vmatprep.subr.mxu1 %v155_v9  ;;  %v515_v9 = vld [vmem:[%s1180_s2] ss:$0 sm:$0xff]  ;;  %s732_s2 = scalar_lea.vmem %s503_s6, 128 }
  0x30   :  { %582 = vmatpush3.msra.mxu1 %v139_v0  ;;  %p733_p0 = scmp.ne.s32.totalorder %s503_s6, %s732_s2  ;;  %p738_p2 = scmp.lt.s32.totalorder %s732_s2, %s732_s2 }
  0x31   :  { %583 = vmatprep.subr.mxu1 %v154_v11 }
  0x32   :  { %584 = vmatpush3.msra.mxu1 %v138_v12  ;;  %p739_p3 = por %p738_p2, %p737_p1 }
  0x33   :  { %585 = vmatprep.subr.mxu1 %v153_v13 }
  0x34   :  { %586 = vmatpush3.msra.mxu1 %v137_v14  ;;  %p740_p4 = pnand %p739_p3, %p733_p0 }
  0x35   :  { %587 = vmatprep.subr.mxu1 %v152_v15 }
  0x36   :  { %588 = vmatpush3.msra.mxu1 %v136_v16 }
  0x37   :  { %661 = vmatprep.subr.mxu1 %v769_v10 }
  0x7d   :  { %v26_v17 = vpop.permute.xlu1 %25  ;;  %v42_v18 = vpop.permute.xlu0 %41 }
  0x7e   :  { %vm27_vm2 = vcmp.eq.s32.totalorder %v1017_v20, %v26_v17  ;;  %vm43_vm3 = vcmp.eq.s32.totalorder %v1017_v20, %v42_v18 }
  0x82   :  { %v30_v21 = vpop.permute.xlu1 %29  ;;  %v46_v22 = vpop.permute.xlu0 %45 }
  0x83   :  { %vm31_vm0 = vcmp.eq.s32.totalorder %v1017_v20, %v30_v21  ;;  %vm47_vm1 = vcmp.eq.s32.totalorder %v1017_v20, %v46_v22 }
  0x84   :  { %vm32_vm4 = vmor %vm27_vm2, %vm31_vm0 }
  0x85   :  { %vm48_vm7 = vmor %vm43_vm3, %vm47_vm1 }
  0x87   :  { %v51_v23 = vpop.permute.xlu1 %50  ;;  %v35_v24 = vpop.permute.xlu0 %34 }
  0x88   :  { %vm52_vm5 = vcmp.eq.s32.totalorder %v1017_v20, %v51_v23  ;;  %vm36_vm6 = vcmp.eq.s32.totalorder %v1017_v20, %v35_v24 }
  0x89   :  { %vm37_vm8 = vmor %vm32_vm4, %vm36_vm6 }
  0x8a   :  { %vm53_vm9 = vmor %vm48_vm7, %vm52_vm5 }
  0x8b   :  { %516 = vmatprep.mubr.msk.f32.mxu0 %vm53_vm9, %v770_v26 }
  0x8c   :  { %517 = vmatmul.mubr.msk.f32.vlgmr.msra.gmra.mxu0 %vm37_vm8, %v770_v26  ;;  %v74_v27 = vpop.permute.xlu1 %73  ;;  %v58_v33 = vpop.permute.xlu0 %57 }
  0x8d   :  { %627 = vmatpush3.msra.mxu0 %v183_v25  ;;  %658 = vmatprep.mubr.msk.f32.mxu0 %vm771_vm10, %v769_v10  ;;  %vm59_vm11 = vcmp.eq.s32.totalorder %v1017_v20, %v58_v33  ;;  %vm75_vm14 = vcmp.eq.s32.totalorder %v1017_v20, %v74_v27 }
  0x8e   :  { %628 = vmatprep.subr.mxu0 %v769_v10 }
  0x8f   :  { %629 = vmatpush3.msra.mxu0 %v182_v28 }
  0x90   :  { %630 = vmatprep.subr.mxu0 %v769_v10 }
  0x91   :  { %631 = vmatpush3.msra.mxu0 %v181_v29 }
  0x92   :  { %632 = vmatprep.subr.mxu0 %v769_v10  ;;  %v78_v31 = vpop.permute.xlu1 %77  ;;  %v67_v37 = vpop.permute.xlu0 %66 }
  0x93   :  { %633 = vmatpush3.msra.mxu0 %v180_v30  ;;  %vm79_vm13 = vcmp.eq.s32.totalorder %v1017_v20, %v78_v31  ;;  %vm68_vm0 = vcmp.eq.s32.totalorder %v1017_v20, %v67_v37 }
  0x94   :  { %634 = vmatprep.subr.mxu0 %v769_v10  ;;  %vm80_vm2 = vmor %vm75_vm14, %vm79_vm13 }
  0x95   :  { %635 = vmatpush3.msra.mxu0 %v179_v32 }
  0x96   :  { %636 = vmatprep.subr.mxu0 %v769_v10 }
  0x97   :  { %v62_v35 = vpop.permute.xlu1 %61  ;;  %637 = vmatpush3.msra.mxu0 %v178_v34  ;;  %v99_v46 = vpop.permute.xlu0 %98 }
  0x98   :  { %638 = vmatprep.subr.mxu0 %v769_v10  ;;  %vm63_vm12 = vcmp.eq.s32.totalorder %v1017_v20, %v62_v35  ;;  %vm100_vm7 = vcmp.eq.s32.totalorder %v1017_v20, %v99_v46 }
  0x99   :  { %639 = vmatpush3.msra.mxu0 %v177_v36  ;;  %vm64_vm15 = vmor %vm59_vm11, %vm63_vm12 }
  0x9a   :  { %640 = vmatprep.subr.mxu0 %v769_v10  ;;  %vm69_vm4 = vmor %vm64_vm15, %vm68_vm0 }
  0x9b   :  { %641 = vmatpush3.msra.mxu0 %v176_v38 }
  0x9c   :  { %v83_v40 = vpop.permute.xlu1 %82  ;;  %642 = vmatprep.subr.mxu0 %v769_v10 }
  0x9d   :  { %vm84_vm1 = vcmp.eq.s32.totalorder %v1017_v20, %v83_v40  ;;  %643 = vmatpush3.msra.mxu0 %v175_v39 }
  0x9e   :  { %vm85_vm3 = vmor %vm80_vm2, %vm84_vm1  ;;  %644 = vmatprep.subr.mxu0 %v769_v10 }
  0x9f   :  { %518 = vmatprep.mubr.msk.f32.mxu1 %vm85_vm3, %v770_v26  ;;  %645 = vmatpush3.msra.mxu0 %v174_v41 }
  0xa0   :  { %519 = vmatmul.mubr.msk.f32.vlgmr.msra.gmra.mxu1 %vm69_vm4, %v770_v26  ;;  %646 = vmatprep.subr.mxu0 %v769_v10 }
  0xa1   :  { %v90_v43 = vpop.permute.xlu1 %89  ;;  %693 = vmatprep.mubr.msk.f32.mxu1 %vm771_vm10, %v769_v10  ;;  %647 = vmatpush3.msra.mxu0 %v173_v42 }
  0xa2   :  { %648 = vmatprep.subr.mxu0 %v769_v10  ;;  %vm91_vm5 = vcmp.eq.s32.totalorder %v1017_v20, %v90_v43  ;;  %662 = vmatpush3.msra.mxu1 %v417_v51 }
  0xa3   :  { %649 = vmatpush3.msra.mxu0 %v172_v44  ;;  %663 = vmatprep.subr.mxu1 %v769_v10 }
  0xa4   :  { %650 = vmatprep.subr.mxu0 %v769_v10  ;;  %664 = vmatpush3.msra.mxu1 %v416_v52 }
  0xa5   :  { %651 = vmatpush3.msra.mxu0 %v171_v45  ;;  %665 = vmatprep.subr.mxu1 %v769_v10 }
  0xa6   :  { %v94_v48 = vpop.permute.xlu1 %93  ;;  %652 = vmatprep.subr.mxu0 %v769_v10  ;;  %666 = vmatpush3.msra.mxu1 %v415_v53 }
  0xa7   :  { %vm95_vm6 = vcmp.eq.s32.totalorder %v1017_v20, %v94_v48  ;;  %653 = vmatpush3.msra.mxu0 %v170_v47  ;;  %667 = vmatprep.subr.mxu1 %v769_v10 }
  0xa8   :  { %vm96_vm8 = vmor %vm91_vm5, %vm95_vm6  ;;  %654 = vmatprep.subr.mxu0 %v769_v10  ;;  %668 = vmatpush3.msra.mxu1 %v414_v54 }
  0xa9   :  { %vm101_vm9 = vmor %vm96_vm8, %vm100_vm7  ;;  %655 = vmatpush3.msra.mxu0 %v169_v49  ;;  %669 = vmatprep.subr.mxu1 %v769_v10 }
  0xaa   :  { %656 = vmatprep.subr.mxu0 %v769_v10  ;;  %670 = vmatpush3.msra.mxu1 %v413_v55 }
  0xab   :  { %657 = vmatpush3.msra.mxu0 %v168_v50  ;;  %671 = vmatprep.subr.mxu1 %v769_v10 }
  0xac   :  { %659 = vmatmul.mubr.msk.f32.vlgmr.msra.gmra.mxu0 %vm101_vm9, %v770_v26  ;;  %672 = vmatpush3.msra.mxu1 %v412_v56 }
  0xad   :  { %673 = vmatprep.subr.mxu1 %v769_v10 }
  0xae   :  { %674 = vmatpush3.msra.mxu1 %v411_v57 }
  0xaf   :  { %675 = vmatprep.subr.mxu1 %v769_v10 }
  0xb0   :  { %676 = vmatpush3.msra.mxu1 %v410_v58 }
  0xb1   :  { %677 = vmatprep.subr.mxu1 %v769_v10 }
  0xb2   :  { %678 = vmatpush3.msra.mxu1 %v409_v59 }
  0xb3   :  { %679 = vmatprep.subr.mxu1 %v769_v10 }
  0xb4   :  { %680 = vmatpush3.msra.mxu1 %v408_v60 }
  0xb5   :  { %681 = vmatprep.subr.mxu1 %v769_v10 }
  0xb6   :  { %682 = vmatpush3.msra.mxu1 %v407_v61 }
  0xb7   :  { %683 = vmatprep.subr.mxu1 %v769_v10 }
  0xb8   :  { %684 = vmatpush3.msra.mxu1 %v406_v62 }
  0xb9   :  { %685 = vmatprep.subr.mxu1 %v769_v10 }
  0xba   :  { %686 = vmatpush3.msra.mxu1 %v405_v63 }
  0xbb   :  { %687 = vmatprep.subr.mxu1 %v769_v10 }
  0xbc   :  { %688 = vmatpush3.msra.mxu1 %v404_v1 }
  0xbd   :  { %689 = vmatprep.subr.mxu1 %v769_v10 }
  0xbe   :  { %690 = vmatpush3.msra.mxu1 %v403_v2 }
  0xbf   :  { %691 = vmatprep.subr.mxu1 %v769_v10  ;;  %v521_v10 = vld [vmem:[%s1182_s4] ss:$0 sm:$0xff] }
  0xc0   :  { %692 = vmatpush3.msra.mxu1 %v402_v3 }
 0x14c   :  { %v554_v4 = vpop.f32.mrf.mxu0 }
 0x14e   :  { %v555_v6 = vpop.f32.mrf.mxu0 }
 0x14f   :  { %v556_v8 = vadd.f32 %v555_v6, %v554_v4 }
 0x151   :  { %v258_v11 = vadd.f32 %v556_v8, %v515_v9 }
 0x160   :  { %v589_v5 = vpop.f32.mrf.mxu1 }
 0x162   :  { %v590_v7 = vpop.f32.mrf.mxu1 }
 0x163   :  { %v591_v0 = vadd.f32 %v590_v7, %v589_v5 }
 0x165   :  { %v328_v12 = vadd.f32 %v591_v0, %v258_v11 }
 0x16c   :  { %v397_v13 = vpop.f32.mrf.mxu0 }
 0x16d   :  { %v398_v14 = vadd.f32 %v397_v13, %v328_v12 }
 0x16e   :  { %v660_v15 = vpop.f32.mrf.mxu0 }
 0x16f   :  { %730 = vtanh.f32 %v398_v14 }
 0x17c   :  { %v731_v16 = vpop.eup %730 }
 0x17d   :  { %694 = vmatmul.mubr.f32.vlgmr.msra.gmra.mxu1 %v731_v16 }
 0x23d   :  { %v491_v17 = vpop.f32.mrf.mxu1 }
 0x23e   :  { %v492_v18 = vadd.f32 %v521_v10, %v491_v17 }
 0x23f   :  { %v695_v19 = vpop.f32.mrf.mxu1 }
 0x240   :  { %495 = vst [vmem:[#allocation2] sm:$0xff] %v492_v18 }
 0x241   :  { %743 = shalt.err (!%p740_p4)
}
 0x242   :  { %505 = dma.vmem_to_hbm [thread:$0]  %s503_s6, 128, %s1183_s5, [#allocation3]  }
 0x243   :  { %752 = dma.done.wait [#allocation3], 128  }
 0x244   :  { %753 = vsyncadd [#allocation3], 4294967168 }
 0x245   :  { %509 = vsyncpa [#allocation3], 1 }

</bundles_post_ra>
